<compile_context>
chip_gen: v6e
topology: v6e:2x2x1
jax: 0.10.0
libtpu: 0.0.40
codegen_flags: <defaults>
</compile_context>

<pallas_src>
import functools

import jax
import jax.numpy as jnp
from jax.experimental import pallas as pl
from jax.experimental.pallas import tpu as pltpu

_LANE = 128
# Live f32 block-sized arrays per grid step: 4 in + 2 out streams, double buffered
# (12), plus broadcast masks / loads / stencil temporaries (~12 more).
_LIVE_BLOCK_ARRAYS = 24


def _cdiv(a, b):
    return -(-a // b)


def _helmholtz_kernel(params_ref, masks_ref, xr_ref, xi_ref, kap_ref, gam_ref,
                      yr_ref, yi_ref, *, n, lanes):
    # params (SMEM f32[4]): [1/h^2, omega, omega^2, omega^2 * alpha_SL]
    inv_h2 = params_ref[0]
    omega = params_ref[1]
    w2 = params_ref[2]
    w2a = params_ref[3]

    xr = xr_ref[...]
    xi = xi_ref[...]
    kap = kap_ref[...]
    gam = gam_ref[...]
    blk = xr.shape

    # Boundary masks precomputed in the wrapper; broadcast once per step and reused
    # by both the real and imag stencils (hoisted - no per-where broadcast_in_dim).
    um = jnp.broadcast_to(masks_ref[0:1, :], blk)   # (i+1, j) exists
    dm = jnp.broadcast_to(masks_ref[1:2, :], blk)   # (i-1, j) exists
    lm = jnp.broadcast_to(masks_ref[2:3, :], blk)   # (i, j+1) exists
    rm = jnp.broadcast_to(masks_ref[3:4, :], blk)   # (i, j-1) exists

    def nbr_sum(x):
        # Masked 4-neighbor sum. Lane rolls stay inside a plane (one plane per
        # sublane row); masks kill wrap-around at plane / lane-pad boundaries.
        # TODO(synk): if the kernel ever becomes XLU-bound (v7x, bf16 I/O), switch
        # to a (T, m, n) block with sublane-offset ref loads for the +/-n neighbors
        # so only the +/-1 lane rolls remain.
        s = um * pltpu.roll(x, shift=lanes - n, axis=1)       # x[i+1, j]
        s = s + dm * pltpu.roll(x, shift=n, axis=1)           # x[i-1, j]
        s = s + lm * pltpu.roll(x, shift=lanes - 1, axis=1)   # x[i, j+1]
        s = s + rm * pltpu.roll(x, shift=1, axis=1)           # x[i, j-1]
        return s

    # Helmholtz matrix M = m_r + 1j*m_i with
    #   m_r = kappa^2 * omega^2
    #   m_i = -kappa^2 * (omega*gamma + omega^2*alpha_SL)    (alpha_SL = 0 if not SL)
    # Folded combine:  y = conv(x) - M*x,  conv(x) = inv_h2*(4x - nbr_sum(x))
    #   yr = (4*inv_h2 - m_r)*xr - (-m_i)*xi - inv_h2*nbr_sum(xr)
    #   yi = (4*inv_h2 - m_r)*xi + (-m_i)*xr - inv_h2*nbr_sum(xi)
    k2 = kap * kap
    diag = 4.0 * inv_h2 - k2 * w2
    mi_neg = k2 * (omega * gam + w2a)          # = -Im(M)

    yr_ref[...] = diag * xr - mi_neg * xi - inv_h2 * nbr_sum(xr)
    yi_ref[...] = diag * xi + mi_neg * xr - inv_h2 * nbr_sum(xi)


def _vmem_limit_bytes():
    """Generation-aware scoped-VMEM limit (bytes)."""
    cap = None
    try:
        info = pltpu.get_tpu_info()
        cap = getattr(info, "vmem_capacity_bytes", None)
    except Exception:
        cap = None
    if not cap:
        cap = 64 * 1024 * 1024          # conservative default (v7x per-TC VMEM)
    limit = min((int(cap) * 3) // 4, 96 * 1024 * 1024)   # v5e/v6e: 96 MiB, v7x: 48 MiB
    return max(limit, 32 * 1024 * 1024)


def _choose_tile_rows(p, lanes, budget_bytes, min_steps=4):
    """Flattened planes per grid step.

    Budgets ~_LIVE_BLOCK_ARRAYS live block-sized f32 arrays (streams, double
    buffers and kernel temporaries), never collapses the grid to a single step
    when p allows >= min_steps (keeps the software pipeline and the v7x megacore
    split alive), and keeps the sublane dim a multiple of 8 or the full extent.
    """
    per_row = _LIVE_BLOCK_ARRAYS * lanes * 4
    t = max(1, budget_bytes // per_row)
    t = min(t, max(1, _cdiv(p, min_steps)))   # never collapse the pipeline
    if t >= p:
        return p
    if t < 8:
        return p if p <= 8 else 8             # minimum practical sublane tile
    t = (t // 8) * 8
    steps = _cdiv(p, t)
    if steps % 2:                             # prefer an even step count (v7x: 2 TCs)
        t_alt = _cdiv(_cdiv(p, steps + 1), 8) * 8
        if 8 <= t_alt < p and _cdiv(p, t_alt) % 2 == 0:
            t = t_alt
    return t


def _boundary_masks(m, n, lanes):
    """(4, lanes) f32 0/1 masks: neighbor (i+1,j)/(i-1,j)/(i,j+1)/(i,j-1) exists."""
    flat = jnp.arange(lanes, dtype=jnp.int32)
    col = flat % n
    mn = m * n
    real = flat < mn
    up = flat < mn - n
    dn = (flat >= n) & real
    lf = (col < n - 1) & real
    rt = (col > 0) & real
    return jnp.stack([up, dn, lf, rt]).astype(jnp.float32)


def _helmholtz_matvec_flat(xr, xi, kap, gam, m, n, omega, h, SL=False,
                           alpha=0.5, tile_rows=None):
    """Core Pallas call on flattened planes: all args are (P, m*n) float32."""
    p, mn = xr.shape
    assert mn == m * n
    # Lane-dense layout: pad each flattened plane to a multiple of 128 lanes so
    # every store is a dense vst and rolls act on a lane-aligned length. Typical
    # solver grids (m*n multiple of 128) take the no-pad fast path.
    lanes = _cdiv(mn, _LANE) * _LANE
    if lanes != mn:
        padw = ((0, 0), (0, lanes - mn))
        xr, xi = jnp.pad(xr, padw), jnp.pad(xi, padw)
        kap, gam = jnp.pad(kap, padw), jnp.pad(gam, padw)

    vmem_limit = _vmem_limit_bytes()
    t = tile_rows if tile_rows is not None else _choose_tile_rows(p, lanes, vmem_limit // 2)
    grid = (pl.cdiv(p, t),)
    # NOTE: when p % t != 0 the last block reads out-of-range rows; those rows are
    # never stored, and the padded kappa/gamma are zeros, so intermediates stay finite.
    block = pl.BlockSpec((t, lanes), lambda i: (i, 0))
    mask_spec = pl.BlockSpec((4, lanes), lambda i: (0, 0))   # constant block: fetched once

    # Runtime scalars live in SMEM -> sweeping omega/h/alpha does not recompile,
    # and SL=True/False share the same compiled kernel.
    w2 = float(omega) * float(omega)
    params = jnp.array(
        [1.0 / (float(h) * float(h)), float(omega), w2,
         w2 * (float(alpha) if SL else 0.0)], dtype=jnp.float32)
    masks = _boundary_masks(m, n, lanes)

    kernel = functools.partial(_helmholtz_kernel, n=n, lanes=lanes)
    # TODO(synk): if a profile shows exposed DMA, sweep pipeline_mode=pl.Buffered(3)
    # on the four big input specs (watch the v7x 64 MiB budget).
    yr, yi = pl.pallas_call(
        kernel,
        grid=grid,
        in_specs=[pl.BlockSpec(memory_space=pltpu.MemorySpace.SMEM),
                  mask_spec, block, block, block, block],
        out_specs=[block, block],
        out_shape=(jax.ShapeDtypeStruct((p, lanes), jnp.float32),
                   jax.ShapeDtypeStruct((p, lanes), jnp.float32)),
        compiler_params=pltpu.CompilerParams(
            dimension_semantics=("parallel",),
            vmem_limit_bytes=int(vmem_limit)),
    )(params, masks, xr, xi, kap, gam)

    if lanes != mn:
        yr, yi = yr[:, :mn], yi[:, :mn]
    return yr, yi


def helmholtz_matvec_planar(xr, xi, kappa, gamma, omega, SL=False, alpha=0.5,
                            tile_rows=None):
    """Fast path: split real/imag float32 planes (P, m, n) -> (yr, yi).

    Use this inside an iterative solver to avoid the complex64 <-> planar HBM
    round trip on every matvec.
    TODO(synk): an optional bf16 I/O mode would halve HBM traffic on v5e/v6e;
    validate stencil cancellation error against solver tolerance first.
    """
    p, m, n = xr.shape
    h = 1.0 / m
    mn = m * n
    yr, yi = _helmholtz_matvec_flat(
        xr.reshape(p, mn), xi.reshape(p, mn),
        kappa.reshape(p, mn), gamma.reshape(p, mn),
        m, n, omega, h, SL, alpha, tile_rows)
    return yr.reshape(p, m, n), yi.reshape(p, m, n)


def helmholtz_forward(x, kappa, gamma, omega, SL=False):
    """Module-parity path: complex input, dims==4 / dims==2 / dims==1 glue."""
    batch, c, m, n = kappa.shape
    h = 1.0 / m
    dims = x.ndim
    if dims == 2:
        # TODO(synk): fold this (m,n,c,batch)->(batch,c,m,n) permutation into the
        # pallas DMA (index_map over a 4-D view) instead of a separate XLA pass.
        x4 = x.reshape(m, n, c, batch).transpose(3, 2, 0, 1)
    elif dims == 1:
        # module assumes a single (1, 1, m, n) plane here
        x4 = x.reshape(1, 1, m, n)
    else:
        x4 = x

    bc = x4.shape[0] * x4.shape[1]
    # TODO(synk): inside an iterative solver keep state planar float32 and call
    # helmholtz_matvec_planar directly; this complex split/merge costs ~2 extra
    # full-array HBM passes per matvec (or de-interleave a bitcast complex view
    # inside the kernel).
    xr = jnp.real(x4).astype(jnp.float32).reshape(bc, m * n)
    xi = jnp.imag(x4).astype(jnp.float32).reshape(bc, m * n)
    kap = kappa.astype(jnp.float32).reshape(batch * c, m * n)[:bc]
    gam = gamma.astype(jnp.float32).reshape(batch * c, m * n)[:bc]

    yr, yi = _helmholtz_matvec_flat(xr, xi, kap, gam, m, n, omega, h, SL)

    y = (yr + 1j * yi).astype(jnp.complex64)
    if dims == 2:
        y = y.reshape(batch, c, m, n)
        return y.transpose(2, 3, 1, 0).reshape(-1, batch)
    if dims == 1:
        return y.reshape(-1)
    return y.reshape(batch, c, m, n)


def _ref_forward(x, kappa, gamma, omega, SL=False):
    # plain-JAX reference of Helmholtz.matvec for validation
    h = 1.0 / kappa.shape[-2]
    xp = jnp.pad(x, ((0, 0), (0, 0), (1, 1), (1, 1)))
    conv = (4.0 * x
            - xp[:, :, :-2, 1:-1] - xp[:, :, 2:, 1:-1]
            - xp[:, :, 1:-1, :-2] - xp[:, :, 1:-1, 2:]) / (h * h)
    if SL:
        M = kappa ** 2 * omega * (omega - 1j * gamma - 1j * omega * 0.5)
    else:
        M = kappa ** 2 * omega * (omega - 1j * gamma)
    return conv - M * x


if __name__ == "__main__":
    key = jax.random.PRNGKey(0)
    batch, c, m, n = 2, 1, 16, 16
    k1, k2, k3, k4 = jax.random.split(key, 4)

    # deterministic "parameters" of the module (kappa, gamma, omega)
    kappa = 0.5 + 0.5 * jax.random.uniform(k1, (batch, c, m, n), dtype=jnp.float32)
    gamma = 0.05 * jax.random.uniform(k2, (batch, c, m, n), dtype=jnp.float32)
    omega = 20.0

    # complex input x (NCHW), as used by the module's 4-D forward path
    xr0 = jax.random.normal(k3, (batch, c, m, n), dtype=jnp.float32)
    xi0 = jax.random.normal(k4, (batch, c, m, n), dtype=jnp.float32)
    x = (xr0 + 1j * xi0).astype(jnp.complex64)

    # dims==4 complex path (module parity), SL=False
    y = jax.block_until_ready(helmholtz_forward(x, kappa, gamma, omega, SL=False))
    y_ref = _ref_forward(x, kappa, gamma, omega, SL=False)
    assert y.shape == (batch, c, m, n) and y.dtype == jnp.complex64
    assert jnp.allclose(y, y_ref, rtol=1e-4, atol=1e-2), "mismatch vs reference"

    # SL=True (shifted Laplacian) branch (same compiled kernel, different SMEM params)
    y_sl = jax.block_until_ready(helmholtz_forward(x, kappa, gamma, omega, SL=True))
    y_sl_ref = _ref_forward(x, kappa, gamma, omega, SL=True)
    assert jnp.allclose(y_sl, y_sl_ref, rtol=1e-4, atol=1e-2), "SL mismatch"

    # dims==2 path used by fgmres
    x2 = x.transpose(2, 3, 1, 0).reshape(-1, batch)
    y2 = jax.block_until_ready(helmholtz_forward(x2, kappa, gamma, omega))
    y2_ref = y_ref.transpose(2, 3, 1, 0).reshape(-1, batch)
    assert jnp.allclose(y2, y2_ref, rtol=1e-4, atol=1e-2), "dims==2 mismatch"

    # planar fast path with a multi-step, pipelined grid (16 planes -> 2 steps of 8)
    p = 16
    kp1, kp2, kp3, kp4 = jax.random.split(jax.random.PRNGKey(1), 4)
    kap_p = 0.5 + 0.5 * jax.random.uniform(kp1, (p, 1, m, n), dtype=jnp.float32)
    gam_p = 0.05 * jax.random.uniform(kp2, (p, 1, m, n), dtype=jnp.float32)
    xr_p = jax.random.normal(kp3, (p, 1, m, n), dtype=jnp.float32)
    xi_p = jax.random.normal(kp4, (p, 1, m, n), dtype=jnp.float32)
    yr_p, yi_p = helmholtz_matvec_planar(
        xr_p.reshape(p, m, n), xi_p.reshape(p, m, n),
        kap_p.reshape(p, m, n), gam_p.reshape(p, m, n), omega)
    yr_p, yi_p = jax.block_until_ready((yr_p, yi_p))
    yp_ref = _ref_forward((xr_p + 1j * xi_p).astype(jnp.complex64), kap_p, gam_p, omega)
    assert jnp.allclose(yr_p.reshape(p, 1, m, n), jnp.real(yp_ref),
                        rtol=1e-4, atol=1e-2), "planar real mismatch"
    assert jnp.allclose(yi_p.reshape(p, 1, m, n), jnp.imag(yp_ref),
                        rtol=1e-4, atol=1e-2), "planar imag mismatch"

    # non-multiple-of-128 plane (m*n = 1000 -> 1024 lanes, pad < n): exercises the
    # lane-padded roll/mask path flagged in the review.
    mo, no, po = 10, 100, 4
    ko1, ko2, ko3, ko4 = jax.random.split(jax.random.PRNGKey(2), 4)
    kap_o = 0.5 + 0.5 * jax.random.uniform(ko1, (po, 1, mo, no), dtype=jnp.float32)
    gam_o = 0.05 * jax.random.uniform(ko2, (po, 1, mo, no), dtype=jnp.float32)
    xr_o = jax.random.normal(ko3, (po, 1, mo, no), dtype=jnp.float32)
    xi_o = jax.random.normal(ko4, (po, 1, mo, no), dtype=jnp.float32)
    yr_o, yi_o = helmholtz_matvec_planar(
        xr_o.reshape(po, mo, no), xi_o.reshape(po, mo, no),
        kap_o.reshape(po, mo, no), gam_o.reshape(po, mo, no), omega)
    yr_o, yi_o = jax.block_until_ready((yr_o, yi_o))
    yo_ref = _ref_forward((xr_o + 1j * xi_o).astype(jnp.complex64), kap_o, gam_o, omega)
    assert jnp.allclose(yr_o.reshape(po, 1, mo, no), jnp.real(yo_ref),
                        rtol=1e-4, atol=1e-2), "padded-plane real mismatch"
    assert jnp.allclose(yi_o.reshape(po, 1, mo, no), jnp.imag(yo_ref),
                        rtol=1e-4, atol=1e-2), "padded-plane imag mismatch"

    print("KERNEL_OK")
</pallas_src>

<mosaic_0001>
module attributes {stable_mosaic.version = 11 : i64} {
  func.func @_helmholtz_kernel(%arg0: i32, %arg1: memref<4xf32, #tpu.memory_space<smem>>, %arg2: memref<4x256xf32, #tpu.memory_space<vmem>>, %arg3: memref<2x256xf32, #tpu.memory_space<vmem>>, %arg4: memref<2x256xf32, #tpu.memory_space<vmem>>, %arg5: memref<2x256xf32, #tpu.memory_space<vmem>>, %arg6: memref<2x256xf32, #tpu.memory_space<vmem>>, %arg7: memref<2x256xf32, #tpu.memory_space<vmem>>, %arg8: memref<2x256xf32, #tpu.memory_space<vmem>>) attributes {dimension_semantics = [#tpu.dimension_semantics<parallel>], iteration_bounds = array<i64: 1>, scalar_prefetch = 0 : i64, scratch_operands = 0 : i64, tpu.core_type = #tpu.core_type<tc>, window_params = [{transform_indices = @transform_0, window_bounds = array<i64: 4>}, {pipeline_mode = #tpu.pipeline_mode<synchronous>, transform_indices = @transform_1, window_bounds = array<i64: 4, 256>}, {transform_indices = @transform_2, window_bounds = array<i64: 2, 256>}, {transform_indices = @transform_3, window_bounds = array<i64: 2, 256>}, {transform_indices = @transform_4, window_bounds = array<i64: 2, 256>}, {transform_indices = @transform_5, window_bounds = array<i64: 2, 256>}, {transform_indices = @transform_6, window_bounds = array<i64: 2, 256>}, {transform_indices = @transform_7, window_bounds = array<i64: 2, 256>}]} {
    %c0 = arith.constant 0 : index
    %0 = memref.load %arg1[%c0] : memref<4xf32, #tpu.memory_space<smem>>
    %c1 = arith.constant 1 : index
    %1 = memref.load %arg1[%c1] : memref<4xf32, #tpu.memory_space<smem>>
    %c2 = arith.constant 2 : index
    %2 = memref.load %arg1[%c2] : memref<4xf32, #tpu.memory_space<smem>>
    %c3 = arith.constant 3 : index
    %3 = memref.load %arg1[%c3] : memref<4xf32, #tpu.memory_space<smem>>
    %c0_0 = arith.constant 0 : index
    %c0_1 = arith.constant 0 : index
    %4 = vector.load %arg3[%c0_0, %c0_1] : memref<2x256xf32, #tpu.memory_space<vmem>>, vector<2x256xf32>
    %c0_2 = arith.constant 0 : index
    %c0_3 = arith.constant 0 : index
    %5 = vector.load %arg4[%c0_2, %c0_3] : memref<2x256xf32, #tpu.memory_space<vmem>>, vector<2x256xf32>
    %c0_4 = arith.constant 0 : index
    %c0_5 = arith.constant 0 : index
    %6 = vector.load %arg5[%c0_4, %c0_5] : memref<2x256xf32, #tpu.memory_space<vmem>>, vector<2x256xf32>
    %c0_6 = arith.constant 0 : index
    %c0_7 = arith.constant 0 : index
    %7 = vector.load %arg6[%c0_6, %c0_7] : memref<2x256xf32, #tpu.memory_space<vmem>>, vector<2x256xf32>
    %c0_8 = arith.constant 0 : index
    %c0_9 = arith.constant 0 : index
    %8 = vector.load %arg2[%c0_8, %c0_9] : memref<4x256xf32, #tpu.memory_space<vmem>>, vector<1x256xf32>
    %9 = vector.shape_cast %8 : vector<1x256xf32> to vector<1x256xf32>
    %10 = vector.broadcast %9 : vector<1x256xf32> to vector<2x256xf32>
    %c1_10 = arith.constant 1 : index
    %c0_11 = arith.constant 0 : index
    %11 = vector.load %arg2[%c1_10, %c0_11] : memref<4x256xf32, #tpu.memory_space<vmem>>, vector<1x256xf32>
    %12 = vector.shape_cast %11 : vector<1x256xf32> to vector<1x256xf32>
    %13 = vector.broadcast %12 : vector<1x256xf32> to vector<2x256xf32>
    %c2_12 = arith.constant 2 : index
    %c0_13 = arith.constant 0 : index
    %14 = vector.load %arg2[%c2_12, %c0_13] : memref<4x256xf32, #tpu.memory_space<vmem>>, vector<1x256xf32>
    %15 = vector.shape_cast %14 : vector<1x256xf32> to vector<1x256xf32>
    %16 = vector.broadcast %15 : vector<1x256xf32> to vector<2x256xf32>
    %c3_14 = arith.constant 3 : index
    %c0_15 = arith.constant 0 : index
    %17 = vector.load %arg2[%c3_14, %c0_15] : memref<4x256xf32, #tpu.memory_space<vmem>>, vector<1x256xf32>
    %18 = vector.shape_cast %17 : vector<1x256xf32> to vector<1x256xf32>
    %19 = vector.broadcast %18 : vector<1x256xf32> to vector<2x256xf32>
    %20 = arith.mulf %6, %6 : vector<2x256xf32>
    %cst = arith.constant 4.000000e+00 : f32
    %21 = arith.mulf %cst, %0 : f32
    %22 = vector.broadcast %2 : f32 to vector<2x256xf32>
    %23 = arith.mulf %20, %22 : vector<2x256xf32>
    %24 = vector.broadcast %21 : f32 to vector<2x256xf32>
    %25 = arith.subf %24, %23 : vector<2x256xf32>
    %26 = vector.broadcast %1 : f32 to vector<2x256xf32>
    %27 = arith.mulf %26, %7 : vector<2x256xf32>
    %28 = vector.broadcast %3 : f32 to vector<2x256xf32>
    %29 = arith.addf %27, %28 : vector<2x256xf32>
    %30 = arith.mulf %20, %29 : vector<2x256xf32>
    %31 = arith.mulf %25, %4 : vector<2x256xf32>
    %32 = arith.mulf %30, %5 : vector<2x256xf32>
    %33 = arith.subf %31, %32 : vector<2x256xf32>
    %c240_i32 = arith.constant 240 : i32
    %34 = tpu.dynamic_rotate %4 by %c240_i32 dim 1 : vector<2x256xf32>, i32 -> vector<2x256xf32>
    %35 = arith.mulf %10, %34 : vector<2x256xf32>
    %c16_i32 = arith.constant 16 : i32
    %36 = tpu.dynamic_rotate %4 by %c16_i32 dim 1 : vector<2x256xf32>, i32 -> vector<2x256xf32>
    %37 = arith.mulf %13, %36 : vector<2x256xf32>
    %38 = arith.addf %35, %37 : vector<2x256xf32>
    %c255_i32 = arith.constant 255 : i32
    %39 = tpu.dynamic_rotate %4 by %c255_i32 dim 1 : vector<2x256xf32>, i32 -> vector<2x256xf32>
    %40 = arith.mulf %16, %39 : vector<2x256xf32>
    %41 = arith.addf %38, %40 : vector<2x256xf32>
    %c1_i32 = arith.constant 1 : i32
    %42 = tpu.dynamic_rotate %4 by %c1_i32 dim 1 : vector<2x256xf32>, i32 -> vector<2x256xf32>
    %43 = arith.mulf %19, %42 : vector<2x256xf32>
    %44 = arith.addf %41, %43 : vector<2x256xf32>
    %45 = vector.broadcast %0 : f32 to vector<2x256xf32>
    %46 = arith.mulf %45, %44 : vector<2x256xf32>
    %47 = arith.subf %33, %46 : vector<2x256xf32>
    %c0_16 = arith.constant 0 : index
    %c0_17 = arith.constant 0 : index
    %48 = vector.load %arg7[%c0_16, %c0_17] : memref<2x256xf32, #tpu.memory_space<vmem>>, vector<2x256xf32>
    tpu.vector_store %arg7[%c0_16, %c0_17], %47 {strides = array<i32>} : memref<2x256xf32, #tpu.memory_space<vmem>>, vector<2x256xf32>,
    %49 = arith.mulf %25, %5 : vector<2x256xf32>
    %50 = arith.mulf %30, %4 : vector<2x256xf32>
    %51 = arith.addf %49, %50 : vector<2x256xf32>
    %c240_i32_18 = arith.constant 240 : i32
    %52 = tpu.dynamic_rotate %5 by %c240_i32_18 dim 1 : vector<2x256xf32>, i32 -> vector<2x256xf32>
    %53 = arith.mulf %10, %52 : vector<2x256xf32>
    %c16_i32_19 = arith.constant 16 : i32
    %54 = tpu.dynamic_rotate %5 by %c16_i32_19 dim 1 : vector<2x256xf32>, i32 -> vector<2x256xf32>
    %55 = arith.mulf %13, %54 : vector<2x256xf32>
    %56 = arith.addf %53, %55 : vector<2x256xf32>
    %c255_i32_20 = arith.constant 255 : i32
    %57 = tpu.dynamic_rotate %5 by %c255_i32_20 dim 1 : vector<2x256xf32>, i32 -> vector<2x256xf32>
    %58 = arith.mulf %16, %57 : vector<2x256xf32>
    %59 = arith.addf %56, %58 : vector<2x256xf32>
    %c1_i32_21 = arith.constant 1 : i32
    %60 = tpu.dynamic_rotate %5 by %c1_i32_21 dim 1 : vector<2x256xf32>, i32 -> vector<2x256xf32>
    %61 = arith.mulf %19, %60 : vector<2x256xf32>
    %62 = arith.addf %59, %61 : vector<2x256xf32>
    %63 = vector.broadcast %0 : f32 to vector<2x256xf32>
    %64 = arith.mulf %63, %62 : vector<2x256xf32>
    %65 = arith.subf %51, %64 : vector<2x256xf32>
    %c0_22 = arith.constant 0 : index
    %c0_23 = arith.constant 0 : index
    %66 = vector.load %arg8[%c0_22, %c0_23] : memref<2x256xf32, #tpu.memory_space<vmem>>, vector<2x256xf32>
    tpu.vector_store %arg8[%c0_22, %c0_23], %65 {strides = array<i32>} : memref<2x256xf32, #tpu.memory_space<vmem>>, vector<2x256xf32>,
    return
  }
  func.func @transform_0(%arg0: i32) -> i32 {
    %c0_i32 = arith.constant 0 : i32
    %c0_i32_0 = arith.constant 0 : i32
    return %c0_i32 : i32
  }
  func.func @transform_1(%arg0: i32) -> (i32, i32) {
    %c0_i32 = arith.constant 0 : i32
    %c0_i32_0 = arith.constant 0 : i32
    %c0_i32_1 = arith.constant 0 : i32
    return %c0_i32, %c0_i32_0 : i32, i32
  }
  func.func @transform_2(%arg0: i32) -> (i32, i32) {
    %c0_i32 = arith.constant 0 : i32
    %c0_i32_0 = arith.constant 0 : i32
    return %arg0, %c0_i32 : i32, i32
  }
  func.func @transform_3(%arg0: i32) -> (i32, i32) {
    %c0_i32 = arith.constant 0 : i32
    %c0_i32_0 = arith.constant 0 : i32
    return %arg0, %c0_i32 : i32, i32
  }
  func.func @transform_4(%arg0: i32) -> (i32, i32) {
    %c0_i32 = arith.constant 0 : i32
    %c0_i32_0 = arith.constant 0 : i32
    return %arg0, %c0_i32 : i32, i32
  }
  func.func @transform_5(%arg0: i32) -> (i32, i32) {
    %c0_i32 = arith.constant 0 : i32
    %c0_i32_0 = arith.constant 0 : i32
    return %arg0, %c0_i32 : i32, i32
  }
  func.func @transform_6(%arg0: i32) -> (i32, i32) {
    %c0_i32 = arith.constant 0 : i32
    %c0_i32_0 = arith.constant 0 : i32
    return %arg0, %c0_i32 : i32, i32
  }
  func.func @transform_7(%arg0: i32) -> (i32, i32) {
    %c0_i32 = arith.constant 0 : i32
    %c0_i32_0 = arith.constant 0 : i32
    return %arg0, %c0_i32 : i32, i32
  }
}

</mosaic_0001>

<bundles_post_ra>
// kernel: tpu_custom_call.1
= control target key start
LH: loop header
LB: loop body
LE: loop exit
PB: predicated region body
PF: predicated region fallthrough
CT: control target
= control target key end

     0   :  { %13 = vsyncpa [#allocation5], 0  ;;  %s558_s0 = inlined_call_operand.hbm [shape: f32[4], index: 0, kind: input, shape index: {}]   ;;  %s559_s1 = inlined_call_operand.hbm [shape: f32[4,256], index: 1, kind: input, shape index: {}]   ;;  %s560_s2 = inlined_call_operand.hbm [shape: f32[2,256], index: 2, kind: input, shape index: {}]   ;;  %s561_s3 = inlined_call_operand.vmem [shape: f32[2,256], index: 3, kind: input, shape index: {}]   ;;  %s562_s4 = inlined_call_operand.hbm [shape: f32[2,256], index: 4, kind: input, shape index: {}]   ;;  %s563_s5 = inlined_call_operand.vmem [shape: f32[2,256], index: 5, kind: input, shape index: {}]   ;;  %s564_s6 = inlined_call_operand.hbm [shape: f32[2,256], index: 6, kind: output, shape index: {0}]   ;;  %s565_s7 = inlined_call_operand.hbm [shape: f32[2,256], index: 7, kind: output, shape index: {1}]  }
   0x1   :  { %14 = vsyncpa [#allocation3], 0 }
   0x2   :  { %15 = vsyncpa [#allocation8], 0 }
   0x3   :  { %16 = vsyncpa [#allocation4], 0 }
   0x4   :  { %17 = vsyncpa [#allocation12], 0  ;;  %s447_s24 = smov [#allocation7]   ;;  %s448_s26 = smov [#allocation6]  }
   0x5   :  { %s42_s25 = sshll.u32 %s447_s24, 4  ;;  %s32_s27 = sshll.u32 %s448_s26, 4  ;;  %s43_s25 = int_to_ptr.vmem [resolvable:$true] %s42_s25  ;;  %s33_s27 = int_to_ptr.vmem [resolvable:$true] %s32_s27 }
   0x6   :  { %s337_s28 = scalar_lea.vmem %s43_s25, 64  ;;  %p342_p1 = scmp.lt.s32.totalorder %s43_s25, %s43_s25 }
   0x7   :  { %p338_p0 = scmp.ne.s32.totalorder %s43_s25, %s337_s28  ;;  %p343_p2 = scmp.lt.s32.totalorder %s337_s28, %s337_s28 }
   0x9   :  { %p344_p3 = por %p343_p2, %p342_p1 }
   0xb   :  { %p345_p4 = pnand %p344_p3, %p338_p0 }
   0xd   :  { %348 = shalt.err (!%p345_p4)
}
   0xe   :  { %45 = dma.hbm_to_vmem [thread:$0]  %s560_s2, 64, %s43_s25, [#allocation8]  }
   0xf   :  { %s449_s8 = smov [#allocation2]   ;;  %s365_s11 = scalar_lea.vmem %s33_s27, 128 }
  0x10   :  { %25 = dma.hbm_to_smem %s558_s0, 16, %s449_s8, [#allocation5]  }
  0x11   :  { %p366_p5 = scmp.ne.s32.totalorder %s33_s27, %s365_s11  ;;  %p370_p6 = scmp.lt.s32.totalorder %s33_s27, %s33_s27 }
  0x12   :  { %p371_p7 = scmp.lt.s32.totalorder %s365_s11, %s365_s11 }
  0x14   :  { %p372_p8 = por %p371_p7, %p370_p6 }
  0x16   :  { %p373_p9 = pnand %p372_p8, %p366_p5 }
  0x18   :  { %376 = shalt.err (!%p373_p9)
}
  0x19   :  { %35 = dma.hbm_to_vmem [thread:$0]  %s559_s1, 128, %s33_s27, [#allocation3]  }
  0x1a   :  { %s450_s14 = smov [#allocation9]  }
  0x1b   :  { %s54_s15 = sshll.u32 %s450_s14, 4  ;;  %s55_s15 = int_to_ptr.vmem [resolvable:$true] %s54_s15 }
  0x1c   :  { %s385_s2 = scalar_lea.vmem %s55_s15, 64  ;;  %p390_p11 = scmp.lt.s32.totalorder %s55_s15, %s55_s15 }
  0x1d   :  { %p386_p10 = scmp.ne.s32.totalorder %s55_s15, %s385_s2  ;;  %p391_p12 = scmp.lt.s32.totalorder %s385_s2, %s385_s2 }
  0x1f   :  { %p392_p13 = por %p391_p12, %p390_p11 }
  0x21   :  { %p393_p0 = pnand %p392_p13, %p386_p10 }
  0x23   :  { %396 = shalt.err (!%p393_p0)
}
  0x24   :  { %57 = dma.hbm_to_vmem [thread:$0]  %s562_s4, 64, %s55_s15, [#allocation8]  }
  0x25   :  { %437 = dma.done.wait [#allocation5], 16  }
  0x26   :  { %438 = vsyncadd [#allocation5], 4294967280 }
  0x27   :  { %439 = dma.done.wait [#allocation3], 128  }
  0x28   :  { %440 = vsyncadd [#allocation3], 4294967168 }
  0x29   :  { %441 = dma.done.wait [#allocation8], 128  }
  0x2a   :  { %442 = vsyncadd [#allocation8], 4294967168 }
  0x2b   :  { %72 = sfence }
  0x2c   :  { %v83_v0 = vlaneseq  ;;  %v451_v1 = vmov 1983009808   ;;  %v77_v5 = vld [vmem:[#allocation7] sm:$0xf]  ;;  %v78_v7 = vld [vmem:[%s561_s3] sm:$0xf] }
  0x2d   :  { %v148_v2 = vunpack.c.l.s4 %v451_v1  ;;  %s452_s4 = smov 16   ;;  %s453_s18 = smov 112   ;;  %v79_v12 = vld [vmem:[#allocation9] sm:$0xf]  ;;  %v80_v13 = vld [vmem:[%s563_s5] sm:$0xf] }
  0x2e   :  { %v84_v3 = vshrl.u32 %v83_v0, 7  ;;  %s315_s19 = sld [smem:[#allocation2 + $0x1]]  ;;  %v132_v15 = vmul.f32 %v79_v12, %v79_v12  ;;  %s454_s25 = smov 127   ;;  %v531_v32 = vand.u32 127, %v83_v0 }
  0x2f   :  { %v149_v4 = vunpack.c.0.s8 %v148_v2  ;;  %s517_s20 = sld [smem:[#allocation2]]  ;;  %s455_s5 = smov 1   ;;  %v94_v33 = vld [vmem:[#allocation6 + $0x1] ss:$4 sm:$0x3] }
  0x30   :  { %s316_s21 = sld [smem:[#allocation2 + $0x2]]  ;;  %v85_v30 = vsub.s32 0, %v84_v3  ;;  %v89_v31 = vsub.s32 1, %v84_v3  ;;  %vm172_vm0 = vcmp.lt.s32.totalorder %v531_v32, 16  ;;  %vm163_vm1 = vcmp.lt.s32.totalorder %v531_v32, 112  ;;  %s456_s26 = smov [#allocation10]  }
  0x31   :  { %v510_v6 = vsub.s32 %v149_v4, %v84_v3  ;;  %s317_s3 = sld [smem:[#allocation2 + $0x3]]  ;;  %v81_v38 = vld [vmem:[#allocation6] ss:$4 sm:$0x3]  ;;  %vm183_vm2 = vcmp.lt.s32.totalorder %v531_v32, 127  ;;  %vm194_vm3 = vcmp.lt.s32.totalorder %v531_v32, 1 }
  0x32   :  { %v99_v36 = vrot.slane %v94_v33, %v85_v30  ;;  %v103_v37 = vrot.slane %v94_v33, %v89_v31  ;;  %v86_v45 = vrot.slane %v81_v38, %v85_v30  ;;  %v90_v46 = vrot.slane %v81_v38, %v89_v31  ;;  %v107_v57 = vld [vmem:[#allocation6 + $0x2] ss:$4 sm:$0x3]  ;;  %s290_s27 = sshll.u32 %s456_s26, 4  ;;  %s457_s28 = smov [#allocation11]   ;;  %s291_s27 = int_to_ptr.vmem [resolvable:$true] %s290_s27 }
  0x33   :  { %v153_v8 = vrot.slane %v77_v5, %v510_v6  ;;  %v227_v9 = vrot.slane %v78_v7, %v510_v6  ;;  %v112_v0 = vrot.slane %v107_v57, %v85_v30  ;;  %v116_v3 = vrot.slane %v107_v57, %v89_v31  ;;  %s300_s29 = sshll.u32 %s457_s28, 4  ;;  %s397_s30 = scalar_lea.vmem %s291_s27, 64  ;;  %s301_s29 = int_to_ptr.vmem [resolvable:$true] %s300_s29 }
  0x34   :  { %v138_v14 = vstv %s315_s19  ;;  %p398_p1 = scmp.ne.s32.totalorder %s291_s27, %s397_s30  ;;  %p402_p2 = scmp.lt.s32.totalorder %s291_s27, %s291_s27 }
  0x35   :  { %168 = vrot.lane.b32.xlu1 %v153_v8, %s452_s4  ;;  %157 = vrot.lane.b32.xlu0 %v153_v8, %s453_s18  ;;  %v154_v10 = vcombine.high %v153_v8, %v153_v8  ;;  %v228_v11 = vcombine.high %v227_v9, %v227_v9  ;;  %v139_v16 = vmul.f32 %v138_v14, %v80_v13  ;;  %s133_s24 = smul.f32 4.0, %s517_s20  ;;  %v120_v13 = vld [vmem:[#allocation6 + $0x3] ss:$4 sm:$0x3]  ;;  %p403_p3 = scmp.lt.s32.totalorder %s397_s30, %s397_s30 }
  0x36   :  { %v134_v17 = vstv %s316_s21 }
  0x37   :  { %v135_v18 = vmul.f32 %v134_v17, %v132_v15  ;;  %v136_v19 = vstv %s133_s24  ;;  %v140_v20 = vstv %s317_s3  ;;  %p404_p4 = por %p403_p3, %p402_p2 }
  0x38   :  { %v141_v21 = vadd.f32 %v140_v20, %v139_v16  ;;  %v125_v20 = vrot.slane %v120_v13, %v85_v30 }
  0x39   :  { %231 = vrot.lane.b32.xlu0 %v227_v9, %s453_s18  ;;  %170 = vrot.lane.b32.xlu1 %v154_v10, %s452_s4  ;;  %v137_v22 = vsub.f32 %v136_v19, %v135_v18  ;;  %p405_p5 = pnand %p404_p4, %p398_p1 }
  0x3a   :  { %v142_v23 = vmul.f32 %v141_v21, %v132_v15 }
  0x3b   :  { %v523_v24 = vmul.f32 %v137_v22, %v77_v5  ;;  %v217_v27 = vmul.f32 %v137_v22, %v78_v7 }
  0x3c   :  { %v525_v25 = vmul.f32 %v142_v23, %v78_v7  ;;  %v218_v28 = vmul.f32 %v142_v23, %v77_v5  ;;  %v129_v23 = vrot.slane %v120_v13, %v89_v31 }
  0x3d   :  { %233 = vrot.lane.b32.xlu1 %v228_v11, %s453_s18  ;;  %159 = vrot.lane.b32.xlu0 %v154_v10, %s453_s18 }
  0x3e   :  { %v145_v26 = vsub.f32 %v523_v24, %v525_v25  ;;  %v529_v29 = vadd.f32 %v218_v28, %v217_v27 }
  0x41   :  { %241 = vrot.lane.b32.xlu1 %v228_v11, %s452_s4  ;;  %239 = vrot.lane.b32.xlu0 %v227_v9, %s452_s4 }
  0x45   :  { %181 = vrot.lane.b32.xlu1 %v154_v10, %s454_s25  ;;  %179 = vrot.lane.b32.xlu0 %v153_v8, %s454_s25 }
  0x49   :  { %251 = vrot.lane.b32.xlu1 %v228_v11, %s454_s25  ;;  %249 = vrot.lane.b32.xlu0 %v227_v9, %s454_s25 }
  0x4d   :  { %192 = vrot.lane.b32.xlu1 %v154_v10, %s455_s5  ;;  %190 = vrot.lane.b32.xlu0 %v153_v8, %s455_s5 }
  0x51   :  { %261 = vrot.lane.b32.xlu1 %v228_v11, %s455_s5  ;;  %259 = vrot.lane.b32.xlu0 %v227_v9, %s455_s5 }
  0xa7   :  { %v169_v34 = vpop.permute.xlu1 %168  ;;  %v158_v35 = vpop.permute.xlu0 %157 }
  0xab   :  { %v232_v39 = vpop.permute.xlu0 %231  ;;  %v171_v40 = vpop.permute.xlu1 %170 }
  0xac   :  { %v173_v41 = vsel %vm172_vm0, %v169_v34, %v171_v40  ;;  %v174_v42 = vsel %vm172_vm0, %v171_v40, %v169_v34 }
  0xad   :  { %v175_v43 = vmul.f32 %v174_v42, %v99_v36  ;;  %v176_v44 = vmul.f32 %v173_v41, %v103_v37 }
  0xaf   :  { %v234_v47 = vpop.permute.xlu1 %233  ;;  %v160_v48 = vpop.permute.xlu0 %159 }
  0xb0   :  { %v235_v49 = vsel %vm163_vm1, %v232_v39, %v234_v47  ;;  %v236_v50 = vsel %vm163_vm1, %v234_v47, %v232_v39  ;;  %v164_v51 = vsel %vm163_vm1, %v158_v35, %v160_v48  ;;  %v165_v52 = vsel %vm163_vm1, %v160_v48, %v158_v35 }
  0xb1   :  { %v237_v53 = vmul.f32 %v235_v49, %v86_v45  ;;  %v238_v54 = vmul.f32 %v236_v50, %v90_v46  ;;  %v166_v55 = vmul.f32 %v164_v51, %v86_v45  ;;  %v167_v56 = vmul.f32 %v165_v52, %v90_v46 }
  0xb2   :  { %v201_v39 = vstv %s517_s20 }
  0xb3   :  { %v177_v58 = vadd.f32 %v175_v43, %v166_v55  ;;  %v178_v59 = vadd.f32 %v176_v44, %v167_v56  ;;  %v242_v60 = vpop.permute.xlu1 %241  ;;  %v240_v61 = vpop.permute.xlu0 %239 }
  0xb4   :  { %v243_v62 = vsel %vm172_vm0, %v240_v61, %v242_v60  ;;  %v244_v63 = vsel %vm172_vm0, %v242_v60, %v240_v61 }
  0xb5   :  { %v245_v1 = vmul.f32 %v244_v63, %v99_v36  ;;  %v246_v2 = vmul.f32 %v243_v62, %v103_v37 }
  0xb7   :  { %v247_v4 = vadd.f32 %v245_v1, %v237_v53  ;;  %v248_v5 = vadd.f32 %v246_v2, %v238_v54  ;;  %v182_v7 = vpop.permute.xlu1 %181  ;;  %v180_v8 = vpop.permute.xlu0 %179 }
  0xb8   :  { %v184_v9 = vsel %vm183_vm2, %v180_v8, %v182_v7  ;;  %v185_v10 = vsel %vm183_vm2, %v182_v7, %v180_v8 }
  0xb9   :  { %v186_v11 = vmul.f32 %v184_v9, %v112_v0  ;;  %v187_v12 = vmul.f32 %v185_v10, %v116_v3 }
  0xbb   :  { %v188_v14 = vadd.f32 %v186_v11, %v177_v58  ;;  %v189_v15 = vadd.f32 %v187_v12, %v178_v59  ;;  %v252_v16 = vpop.permute.xlu1 %251  ;;  %v250_v17 = vpop.permute.xlu0 %249 }
  0xbc   :  { %v253_v18 = vsel %vm183_vm2, %v250_v17, %v252_v16  ;;  %v254_v19 = vsel %vm183_vm2, %v252_v16, %v250_v17 }
  0xbd   :  { %v255_v21 = vmul.f32 %v253_v18, %v112_v0  ;;  %v256_v22 = vmul.f32 %v254_v19, %v116_v3 }
  0xbf   :  { %v257_v27 = vadd.f32 %v255_v21, %v247_v4  ;;  %v258_v28 = vadd.f32 %v256_v22, %v248_v5  ;;  %v193_v33 = vpop.permute.xlu1 %192  ;;  %v191_v34 = vpop.permute.xlu0 %190 }
  0xc0   :  { %v195_v35 = vsel %vm194_vm3, %v191_v34, %v193_v33  ;;  %v196_v36 = vsel %vm194_vm3, %v193_v33, %v191_v34 }
  0xc1   :  { %v197_v37 = vmul.f32 %v196_v36, %v125_v20  ;;  %v198_v38 = vmul.f32 %v195_v35, %v129_v23 }
  0xc3   :  { %v199_v40 = vadd.f32 %v197_v37, %v188_v14  ;;  %v200_v41 = vadd.f32 %v198_v38, %v189_v15  ;;  %v262_v42 = vpop.permute.xlu1 %261  ;;  %v260_v43 = vpop.permute.xlu0 %259 }
  0xc4   :  { %v263_v44 = vsel %vm194_vm3, %v260_v43, %v262_v42  ;;  %v264_v30 = vsel %vm194_vm3, %v262_v42, %v260_v43 }
  0xc5   :  { %v202_v45 = vmul.f32 %v201_v39, %v199_v40  ;;  %v203_v46 = vmul.f32 %v201_v39, %v200_v41  ;;  %v265_v31 = vmul.f32 %v264_v30, %v125_v20  ;;  %v266_v47 = vmul.f32 %v263_v44, %v129_v23 }
  0xc7   :  { %v267_v32 = vadd.f32 %v265_v31, %v257_v27  ;;  %v268_v48 = vadd.f32 %v266_v47, %v258_v28  ;;  %v206_v49 = vcombine.low %v202_v45, %v203_v46 }
  0xc9   :  { %v269_v50 = vmul.f32 %v267_v32, %v201_v39  ;;  %v270_v51 = vmul.f32 %v268_v48, %v201_v39  ;;  %v213_v52 = vrot.slane %v206_v49, %v510_v6 }
  0xcb   :  { %v215_v53 = vsub.f32 %v145_v26, %v213_v52  ;;  %v273_v54 = vcombine.low %v269_v50, %v270_v51 }
  0xcd   :  { %216 = vst [vmem:[#allocation10] sm:$0xf] %v215_v53  ;;  %v280_v55 = vrot.slane %v273_v54, %v510_v6 }
  0xce   :  { %408 = shalt.err (!%p405_p5)
}
  0xcf   :  { %293 = dma.vmem_to_hbm [thread:$0]  %s291_s27, 64, %s564_s6, [#allocation4]   ;;  %v282_v24 = vsub.f32 %v529_v29, %v280_v55 }
  0xd0   :  { %s417_s10 = scalar_lea.vmem %s301_s29, 64  ;;  %p422_p7 = scmp.lt.s32.totalorder %s301_s29, %s301_s29 }
  0xd1   :  { %283 = vst [vmem:[#allocation11] sm:$0xf] %v282_v24  ;;  %p418_p6 = scmp.ne.s32.totalorder %s301_s29, %s417_s10  ;;  %p423_p8 = scmp.lt.s32.totalorder %s417_s10, %s417_s10 }
  0xd3   :  { %p424_p9 = por %p423_p8, %p422_p7 }
  0xd5   :  { %p425_p10 = pnand %p424_p9, %p418_p6 }
  0xd7   :  { %428 = shalt.err (!%p425_p10)
}
  0xd8   :  { %303 = dma.vmem_to_hbm [thread:$0]  %s301_s29, 64, %s565_s7, [#allocation12]  }
  0xd9   :  { %443 = dma.done.wait [#allocation4], 64  }
  0xda   :  { %444 = vsyncadd [#allocation4], 4294967232 }
  0xdb   :  { %445 = dma.done.wait [#allocation12], 64  }
  0xdc   :  { %446 = vsyncadd [#allocation12], 4294967232 }
  0xdd   :  { %310 = vsyncpa [#allocation3], 1 }
  0xde   :  { %311 = vsyncpa [#allocation8], 1 }
  0xdf   :  { %312 = vsyncpa [#allocation4], 1 }
  0xe0   :  { %313 = vsyncpa [#allocation12], 1 }
  0xe1   :  { %314 = vsyncpa [#allocation5], 1 }

</bundles_post_ra>
